<compile_context>
chip_gen: v7x
topology: tpu7x:2x2x1
jax: 0.10.0
libtpu: 0.0.40
codegen_flags: <defaults>
</compile_context>

<pallas_src>
import functools

import jax
import jax.numpy as jnp
from jax.experimental import pallas as pl
from jax.experimental.pallas import tpu as pltpu


def _round_up(x, m):
    return ((x + m - 1) // m) * m


def _unembed_kernel(x_ref, w_ref, o_ref, *, compute_dtype):
    # x_ref: (tm, K) block of the flattened residual (input dtype)
    # w_ref: (K, tn) block of the unembedding matrix (input dtype)
    # o_ref: (tm, tn) block of logits (output dtype)
    # Down-cast to the MXU compute dtype inside the kernel (cheap VPU work) so
    # the wrapper never spends an extra HBM round trip casting the full weight.
    x = x_ref[...].astype(compute_dtype)
    w = w_ref[...].astype(compute_dtype)
    o_ref[...] = jnp.dot(x, w, preferred_element_type=jnp.float32).astype(o_ref.dtype)


def _pick_tiles(M, K, N, x_bytes, w_bytes, out_bytes, vmem_budget_bytes):
    """Choose (tm, tn): largest lane-dense tiles whose double-buffered working
    set fits the VMEM budget, preferring a tn that divides d_vocab so the
    weight never needs a padded (i.e. fully copied) HBM version."""
    # 256 rows already fill the MXU; for small batch*pos keep x fully resident
    # (8-sublane granule).  Shrink if the x block alone would eat the budget
    # (very large d_model).
    tm = min(256, _round_up(M, 8))
    while tm > 8 and 2 * tm * K * x_bytes > vmem_budget_bytes // 3:
        tm = _round_up(tm // 2, 8)

    n_cap = _round_up(max(N, 128), 128)

    def fits(tn):
        need = 2 * K * tn * w_bytes          # weight block, double-buffered
        need += 2 * tm * K * x_bytes         # x block, double-buffered
        need += 2 * tm * tn * out_bytes      # output block, double-buffered
        return need <= vmem_budget_bytes

    candidates = (2048, 1536, 1024, 768, 512, 384, 256, 128)
    # First pass: tile that divides d_vocab -> no weight padding / extra copy.
    for cand in candidates:
        tn = min(cand, n_cap)
        if fits(tn) and N % tn == 0:
            return tm, tn
    # Second pass: largest fitting tile (ragged vocab edge handled by padding).
    for cand in candidates:
        tn = min(cand, n_cap)
        if fits(tn):
            return tm, tn
    # TODO(synk): for extremely large d_model add a K grid axis ("arbitrary")
    # with an f32 VMEM accumulator instead of shrinking tiles further.
    return tm, 128


@functools.partial(jax.jit, static_argnames=("compute_dtype",))
def unembed(residual, w_u, *, compute_dtype=jnp.bfloat16):
    """residual: [batch, pos, d_model]; w_u: [d_model, d_vocab].

    Returns logits [batch, pos, d_vocab] in residual.dtype.  MXU operands are
    cast in-kernel to `compute_dtype` (bf16 by default -> ~1e-2 tolerance vs a
    pure-f32 reference) with f32 accumulation on the MXU.
    """
    batch, pos, d_model = residual.shape
    d_vocab = w_u.shape[1]
    out_dtype = residual.dtype

    x = residual.reshape(batch * pos, d_model)
    M, K = x.shape
    N = d_vocab

    x_bytes = x.dtype.itemsize
    w_bytes = w_u.dtype.itemsize
    out_bytes = jnp.dtype(out_dtype).itemsize

    # Block working-set budget safe for the smallest VMEM generation (v7x: 64 MiB).
    vmem_budget = 40 * 1024 * 1024
    tm, tn = _pick_tiles(M, K, N, x_bytes, w_bytes, out_bytes, vmem_budget)

    M_pad = _round_up(M, tm)
    N_pad = _round_up(N, tn)

    if M_pad != M:
        x = jnp.pad(x, ((0, M_pad - M), (0, 0)))
    w = w_u
    if N_pad != N:
        w = jnp.pad(w, ((0, 0), (0, N_pad - N)))

    grid_m = M_pad // tm
    grid_n = N_pad // tn

    # Loop ordering: the operand varying along the INNER grid axis is re-fetched
    # once per outer step, while the outer-axis operand's block index is constant
    # across inner steps (Pallas skips the duplicate DMA).  Pick the ordering
    # with the lower total HBM traffic (weight-stationary for decode-style small
    # M; activation-stationary when batch*pos is large relative to the weight).
    s_x = M_pad * K * x_bytes
    s_w = K * N_pad * w_bytes
    n_outer = grid_n * s_x + s_w <= grid_m * s_w + s_x

    if n_outer:
        grid = (grid_n, grid_m)
        x_spec = pl.BlockSpec((tm, K), lambda j, i: (i, 0))
        w_spec = pl.BlockSpec((K, tn), lambda j, i: (0, j))
        o_spec = pl.BlockSpec((tm, tn), lambda j, i: (i, j))
    else:
        grid = (grid_m, grid_n)
        x_spec = pl.BlockSpec((tm, K), lambda i, j: (i, 0))
        w_spec = pl.BlockSpec((K, tn), lambda i, j: (0, j))
        o_spec = pl.BlockSpec((tm, tn), lambda i, j: (i, j))

    kernel = functools.partial(_unembed_kernel, compute_dtype=compute_dtype)

    out = pl.pallas_call(
        kernel,
        out_shape=jax.ShapeDtypeStruct((M_pad, N_pad), out_dtype),
        grid_spec=pltpu.PrefetchScalarGridSpec(
            num_scalar_prefetch=0,
            grid=grid,
            in_specs=[x_spec, w_spec],
            out_specs=o_spec,
        ),
        compiler_params=pltpu.CompilerParams(
            # No cross-step accumulation => both axes are truly parallel; the
            # outer axis is split across v7x's two TensorCores (no-op on the
            # single-core v5e/v6e).
            dimension_semantics=("parallel", "parallel"),
            vmem_limit_bytes=50 * 1024 * 1024,
        ),
        cost_estimate=pl.CostEstimate(
            flops=2 * M * K * N,
            transcendentals=0,
            bytes_accessed=M * K * x_bytes + K * N * w_bytes + M * N * out_bytes,
        ),
    )(x, w)

    return out[:M, :N].reshape(batch, pos, d_vocab)


if __name__ == "__main__":
    # Small config consistent with the module: d_model=32, d_vocab=256
    batch, pos, d_model, d_vocab = 2, 8, 32, 256

    key = jax.random.PRNGKey(0)
    k_res, k_w = jax.random.split(key)

    residual = jax.random.normal(k_res, (batch, pos, d_model), dtype=jnp.float32)
    # nn.Linear(d_model, d_vocab, bias=False) stores weight as [d_vocab, d_model];
    # we keep the transposed [d_model, d_vocab] layout so the kernel is x @ W.
    w_u = jax.random.normal(k_w, (d_model, d_vocab), dtype=jnp.float32) * 0.02

    logits = unembed(residual, w_u)
    jax.block_until_ready(logits)

    # Reference check (nn.Linear without bias).  bf16 MXU operands with f32
    # accumulation => compare at bf16-level tolerance.
    ref = residual @ w_u
    assert logits.shape == (batch, pos, d_vocab)
    assert jnp.allclose(logits, ref, atol=1e-2, rtol=1e-2), float(
        jnp.max(jnp.abs(logits - ref))
    )

    print("KERNEL_OK")
</pallas_src>

<mosaic_0001>
module attributes {stable_mosaic.version = 11 : i64} {
  func.func @_unembed_kernel(%arg0: i32, %arg1: i32, %arg2: memref<16x32xf32, #tpu.memory_space<vmem>>, %arg3: memref<32x256xf32, #tpu.memory_space<vmem>>, %arg4: memref<16x256xf32, #tpu.memory_space<vmem>>) attributes {dimension_semantics = [#tpu.dimension_semantics<parallel>, #tpu.dimension_semantics<parallel>], iteration_bounds = array<i64: 1, 1>, scalar_prefetch = 0 : i64, scratch_operands = 0 : i64, tpu.core_type = #tpu.core_type<tc>, window_params = [{transform_indices = @transform_0, window_bounds = array<i64: 16, 32>}, {transform_indices = @transform_1, window_bounds = array<i64: 32, 256>}, {transform_indices = @transform_2, window_bounds = array<i64: 16, 256>}]} {
    %c0 = arith.constant 0 : index
    %c0_0 = arith.constant 0 : index
    %0 = vector.load %arg2[%c0, %c0_0] : memref<16x32xf32, #tpu.memory_space<vmem>>, vector<16x32xf32>
    %1 = arith.truncf %0 : vector<16x32xf32> to vector<16x32xbf16>
    %c0_1 = arith.constant 0 : index
    %c0_2 = arith.constant 0 : index
    %2 = vector.load %arg3[%c0_1, %c0_2] : memref<32x256xf32, #tpu.memory_space<vmem>>, vector<32x256xf32>
    %3 = arith.truncf %2 : vector<32x256xf32> to vector<32x256xbf16>
    %cst = arith.constant dense<0.000000e+00> : vector<16x256xf32>
    %4 = tpu.matmul %1, %3, %cst {dimension_numbers = #tpu.dot_dimension_numbers<[1], [0], [0], [1], [0, 0, 1, 1], [], []>} : vector<16x32xbf16>, vector<32x256xbf16>, vector<16x256xf32> -> vector<16x256xf32>
    %c0_3 = arith.constant 0 : index
    %c0_4 = arith.constant 0 : index
    %5 = vector.load %arg4[%c0_3, %c0_4] : memref<16x256xf32, #tpu.memory_space<vmem>>, vector<16x256xf32>
    tpu.vector_store %arg4[%c0_3, %c0_4], %4 {strides = array<i32>} : memref<16x256xf32, #tpu.memory_space<vmem>>, vector<16x256xf32>,
    return
  }
  func.func @transform_0(%arg0: i32, %arg1: i32) -> (i32, i32) {
    %c0_i32 = arith.constant 0 : i32
    %c0_i32_0 = arith.constant 0 : i32
    return %arg1, %c0_i32 : i32, i32
  }
  func.func @transform_1(%arg0: i32, %arg1: i32) -> (i32, i32) {
    %c0_i32 = arith.constant 0 : i32
    %c0_i32_0 = arith.constant 0 : i32
    return %c0_i32, %arg0 : i32, i32
  }
  func.func @transform_2(%arg0: i32, %arg1: i32) -> (i32, i32) {
    %c0_i32 = arith.constant 0 : i32
    return %arg1, %arg0 : i32, i32
  }
}

</mosaic_0001>

<bundles_post_ra>
// kernel: unembed.1
= control target key start
LH: loop header
LB: loop body
LE: loop exit
PB: predicated region body
PF: predicated region fallthrough
CT: control target
= control target key end

     0   :  { %7 = vsyncpa [#allocation3], 0  ;;  %s271_s0 = inlined_call_operand.hbm [shape: f32[16,32], index: 0, kind: input, shape index: {}]   ;;  %s272_s1 = inlined_call_operand.hbm [shape: f32[32,256], index: 1, kind: input, shape index: {}]   ;;  %s273_s2 = inlined_call_operand.hbm [shape: f32[16,256], index: 2, kind: output, shape index: {}]  }
   0x1   :  { %8 = vsyncpa [#allocation6], 0 }
   0x2   :  { %9 = vsyncpa [#allocation4], 0  ;;  %s206_s9 = smov [#allocation2]   ;;  %s134_s13 = scalar_lea.hbm %s271_s0, 256 }
   0x3   :  { %s15_s10 = sshll.u32 %s206_s9, 4  ;;  %p135_p0 = scmp.ne.s32.totalorder %s271_s0, %s134_s13  ;;  %s16_s10 = int_to_ptr.vmem [resolvable:$true] %s15_s10 }
   0x4   :  { %p138_p1 = scmp.lt.u32.totalorder %s134_s13, %s271_s0 }
   0x6   :  { %p140_p2 = pnand %p138_p1, %p135_p0 }
   0x8   :  { %143 = shalt.err (!%p140_p2)
}
   0x9   :  { %s144_s18 = scalar_lea.vmem %s16_s10, 256  ;;  %p149_p4 = scmp.lt.s32.totalorder %s16_s10, %s16_s10 }
   0xa   :  { %p145_p3 = scmp.ne.s32.totalorder %s16_s10, %s144_s18  ;;  %p150_p5 = scmp.lt.s32.totalorder %s144_s18, %s144_s18 }
   0xc   :  { %p151_p6 = por %p150_p5, %p149_p4 }
   0xe   :  { %p152_p7 = pnand %p151_p6, %p145_p3 }
  0x10   :  { %155 = shalt.err (!%p152_p7)
}
  0x11   :  { %s207_s19 = smov 128   ;;  %s208_s20 = smov 8  }
  0x12   :  { %21 = dma.hbm_to_vmem [thread:$0]  %s271_s0, 256, %s16_s10, [#allocation3], %s207_s19, %s207_s19, %s208_s20  }
  0x13   :  { %s209_s23 = smov [#allocation5]   ;;  %s156_s27 = scalar_lea.hbm %s272_s1, 1024 }
  0x14   :  { %s27_s24 = sshll.u32 %s209_s23, 4  ;;  %p157_p8 = scmp.ne.s32.totalorder %s272_s1, %s156_s27  ;;  %s28_s24 = int_to_ptr.vmem [resolvable:$true] %s27_s24 }
  0x15   :  { %p160_p9 = scmp.lt.u32.totalorder %s156_s27, %s272_s1 }
  0x17   :  { %p162_p10 = pnand %p160_p9, %p157_p8 }
  0x19   :  { %165 = shalt.err (!%p162_p10)
}
  0x1a   :  { %s166_s4 = scalar_lea.vmem %s28_s24, 1024  ;;  %p171_p12 = scmp.lt.s32.totalorder %s28_s24, %s28_s24 }
  0x1b   :  { %p167_p11 = scmp.ne.s32.totalorder %s28_s24, %s166_s4  ;;  %p172_p13 = scmp.lt.s32.totalorder %s166_s4, %s166_s4 }
  0x1d   :  { %p173_p0 = por %p172_p13, %p171_p12 }
  0x1f   :  { %p174_p1 = pnand %p173_p0, %p167_p11 }
  0x21   :  { %177 = shalt.err (!%p174_p1)
}
  0x22   :  { %s210_s0 = smov 256   ;;  %s211_s5 = smov 16  }
  0x23   :  { %33 = dma.hbm_to_vmem [thread:$0]  %s272_s1, 1024, %s28_s24, [#allocation6], %s210_s0, %s210_s0, %s211_s5  }
  0x24   :  { %200 = dma.done.wait [#allocation3], 256  }
  0x25   :  { %201 = vsyncadd [#allocation3], 4294967040 }
  0x26   :  { %202 = dma.done.wait [#allocation6], 1024  }
  0x27   :  { %203 = vsyncadd [#allocation6], 4294966272  ;;  %v212_v0 = vmov 0   ;;  %v45_v1 = vld [vmem:[#allocation5 + $0x8] sm:$0xff]  ;;  %v47_v2 = vld [vmem:[#allocation5 + $0x18] sm:$0xff]  ;;  %vm56_vm0 = vcmask 261120  }
  0x28   :  { %92 = vmatprep.mubr.bf16.mxu0 %v212_v0  ;;  %v44_v3 = vld [vmem:[#allocation5] sm:$0xff]  ;;  %v53_v4 = vpack.c.bf16 %v47_v2, %v45_v1  ;;  %v46_v5 = vld [vmem:[#allocation5 + $0x10] sm:$0xff]  ;;  %v49_v6 = vld [vmem:[#allocation5 + $0x28] sm:$0xff]  ;;  %s213_s1 = smov [#allocation7]  }
  0x29   :  { %v51_v7 = vld [vmem:[#allocation5 + $0x38] sm:$0xff]  ;;  %v52_v8 = vpack.c.bf16 %v46_v5, %v44_v3  ;;  %v48_v10 = vld [vmem:[#allocation5 + $0x20] sm:$0xff]  ;;  %v50_v11 = vld [vmem:[#allocation5 + $0x30] sm:$0xff]  ;;  %s112_s8 = sshll.u32 %s213_s1, 4  ;;  %s113_s8 = int_to_ptr.vmem [resolvable:$true] %s112_s8 }
  0x2a   :  { %v55_v9 = vpack.c.bf16 %v51_v7, %v49_v6  ;;  %60 = vmatprep.subr.bf16.mxu0 %v53_v4  ;;  %v54_v12 = vpack.c.bf16 %v50_v11, %v48_v10  ;;  %v41_v13 = vld [vmem:[#allocation2] sm:$0xff]  ;;  %v42_v14 = vld [vmem:[#allocation2 + $0x8] sm:$0xff]  ;;  %s178_s9 = scalar_lea.vmem %s113_s8, 512  ;;  %p183_p3 = scmp.lt.s32.totalorder %s113_s8, %s113_s8 }
  0x2b   :  { %61 = vmatpush1.bf16.msra.mxu0 %v52_v8  ;;  %v43_v15 = vpack.c.bf16 %v42_v14, %v41_v13  ;;  %p179_p2 = scmp.ne.s32.totalorder %s113_s8, %s178_s9  ;;  %p184_p4 = scmp.lt.s32.totalorder %s178_s9, %s178_s9 }
  0x2c   :  { %62 = vmatprep.subr.bf16.mxu0 %v55_v9 }
  0x2d   :  { %p185_p5 = por %p184_p4, %p183_p3 }
  0x2f   :  { %63 = vmatpush1.bf16.msra.mxu0 %v54_v12  ;;  %p186_p6 = pnand %p185_p5, %p179_p2 }
  0x32   :  { %125 = vmatmul.mubr.msk.bf16.vlgmr.msra.gmra.mrb[0].mxu0 %vm56_vm0, %v43_v15 }
 0x105   :  { %v94_v16 = vpop.f32.mrb[0].mxu0 }
 0x106   :  { %103 = vst [vmem:[#allocation7] sm:$0xff] %v94_v16  ;;  %v96_v17 = vpop.f32.mrb[1].mxu0 }
 0x107   :  { %104 = vst [vmem:[#allocation7 + $0x8] sm:$0xff] %v96_v17  ;;  %v98_v18 = vpop.f32.mrb[2].mxu0 }
 0x108   :  { %105 = vst [vmem:[#allocation7 + $0x10] sm:$0xff] %v98_v18  ;;  %v100_v19 = vpop.f32.mrb[3].mxu0 }
 0x109   :  { %106 = vst [vmem:[#allocation7 + $0x18] sm:$0xff] %v100_v19 }
 0x10a   :  { %189 = shalt.err (!%p186_p6)
}
 0x10b   :  { %s190_s12 = scalar_lea.hbm %s273_s2, 512 }
 0x10c   :  { %p191_p7 = scmp.ne.s32.totalorder %s273_s2, %s190_s12  ;;  %p194_p8 = scmp.lt.u32.totalorder %s190_s12, %s273_s2 }
 0x10e   :  { %p196_p9 = pnand %p194_p8, %p191_p7 }
 0x110   :  { %199 = shalt.err (!%p196_p9)
}
 0x111   :  { %118 = dma.vmem_to_hbm [thread:$0]  %s113_s8, 512, %s273_s2, [#allocation4], %s210_s0, %s210_s0, %s211_s5  }
 0x112   :  { %204 = dma.done.wait [#allocation4], 512  }
 0x113   :  { %205 = vsyncadd [#allocation4], 4294966784 }
 0x114   :  { %122 = vsyncpa [#allocation3], 1 }
 0x115   :  { %123 = vsyncpa [#allocation6], 1 }
 0x116   :  { %124 = vsyncpa [#allocation4], 1 }

</bundles_post_ra>
